<compile_context>
chip_gen: v6e
topology: v6e:2x2x1
jax: 0.10.0
libtpu: 0.0.40
codegen_flags: <defaults>
</compile_context>

<pallas_src>
import jax
import jax.numpy as jnp
from jax.experimental import pallas as pl
from jax.experimental.pallas import tpu as pltpu


# ----------------------------- kernels --------------------------------------


def _unembed_kernel_fused(x_ref, w_ref, o_ref):
    # Full-K fused: one MXU pass per (i, j) output tile.  x_ref's block index
    # is constant across the vocab grid axis, so its DMA is skipped after the
    # first j step of each row panel.
    o_ref[...] = jnp.dot(
        x_ref[...], w_ref[...], preferred_element_type=jnp.float32
    ).astype(o_ref.dtype)


def _unembed_kernel_kgrid_f32out(x_ref, w_ref, o_ref):
    # K is the (last, "arbitrary") reduction grid axis; output dtype is f32 so
    # accumulate directly into the resident output tile — no scratch needed.
    @pl.when(pl.program_id(2) == 0)
    def _():
        o_ref[...] = jnp.zeros_like(o_ref)

    o_ref[...] += jnp.dot(
        x_ref[...], w_ref[...], preferred_element_type=jnp.float32
    )


def _unembed_kernel_kgrid(x_ref, w_ref, o_ref, acc_ref):
    # K reduction with an f32 accumulator scratch (non-f32 output dtype).
    @pl.when(pl.program_id(2) == 0)
    def _():
        acc_ref[...] = jnp.zeros_like(acc_ref)

    acc_ref[...] += jnp.dot(
        x_ref[...], w_ref[...], preferred_element_type=jnp.float32
    )

    @pl.when(pl.program_id(2) == pl.num_programs(2) - 1)
    def _():
        o_ref[...] = acc_ref[...].astype(o_ref.dtype)


# ----------------------------- wrapper ---------------------------------------


def _round_up(a, m):
    return (a + m - 1) // m * m


def _sublane_pack(dtype):
    # Rows per native sublane tile: 8 for 4-byte, 16 for 2-byte, 32 for 1-byte.
    return max(8, 32 // jnp.dtype(dtype).itemsize)


def _hw_config():
    """Per-generation tile defaults and VMEM limit."""
    vmem_cap = 128 * 1024 * 1024
    try:
        info = pltpu.get_tpu_info()
        vmem_cap = int(getattr(info, "vmem_capacity_bytes", vmem_cap))
    except Exception:
        pass
    if vmem_cap <= 64 * 1024 * 1024:
        # v7x-class: only 64 MiB VMEM per TensorCore — stay well under it.
        return dict(tm=512, tn=1024, tk=1024, vmem_limit=48 * 1024 * 1024)
    # v5e / v6e class: 128 MiB VMEM.
    return dict(tm=1024, tn=2048, tk=1024, vmem_limit=100 * 1024 * 1024)


def unembed(
    x,
    w_u,
    *,
    out_dtype=None,
    compute_dtype=None,
    tm=None,
    tn=None,
    tk=None,
    vmem_limit_bytes=None,
):
    """x: (b, p, d_emb); w_u: (d_emb, d_vocab). Returns (b, p, d_vocab)."""
    b, p, d_emb = x.shape
    d_emb_w, d_vocab = w_u.shape
    assert d_emb == d_emb_w, "x last dim must match W_U first dim"

    cfg = _hw_config()
    tm = cfg["tm"] if tm is None else tm
    tn = cfg["tn"] if tn is None else tn
    tk = cfg["tk"] if tk is None else tk
    vmem_limit = cfg["vmem_limit"] if vmem_limit_bytes is None else vmem_limit_bytes

    rows = b * p
    x2d = x.reshape(rows, d_emb)
    w = w_u
    if compute_dtype is not None:
        # bf16 operands into the MXU; accumulation stays f32 inside the kernel.
        x2d = x2d.astype(compute_dtype)
        w = w.astype(compute_dtype)
    if out_dtype is None:
        out_dtype = x.dtype

    in_bytes = jnp.dtype(x2d.dtype).itemsize
    out_bytes = jnp.dtype(out_dtype).itemsize
    pack = _sublane_pack(x2d.dtype)

    # Tile sizes bounded by (padded) problem dims, aligned to (pack, 128)/MXU.
    tm_ = min(tm, _round_up(rows, pack))
    tn_ = min(tn, _round_up(d_vocab, 128))
    k_pad = _round_up(d_emb, 128)
    tk_ = min(tk, k_pad)

    budget = int(vmem_limit * 0.85)
    out_is_f32 = jnp.dtype(out_dtype) == jnp.dtype(jnp.float32)

    def fused_bytes(tm_v, tn_v):
        # double-buffered x panel + W panel + output tile
        return (
            2 * (tm_v * k_pad + k_pad * tn_v) * in_bytes
            + 2 * tm_v * tn_v * out_bytes
        )

    def kgrid_bytes(tm_v, tn_v, tk_v):
        acc = 0 if out_is_f32 else tm_v * tn_v * 4
        return (
            2 * (tm_v * tk_v + tk_v * tn_v) * in_bytes
            + 2 * tm_v * tn_v * out_bytes
            + acc
        )

    # Prefer the fused-K path whenever the full (padded) d_emb fits VMEM:
    # x is read from HBM once per row panel instead of N_tiles * K_tiles times.
    use_fused = fused_bytes(tm_, tn_) <= budget
    if use_fused:
        k_p = k_pad
    else:
        # K-grid fallback; shrink tiles until the footprint fits the budget.
        while kgrid_bytes(tm_, tn_, tk_) > budget and tn_ > 128:
            tn_ = max(128, tn_ // 2)
        while kgrid_bytes(tm_, tn_, tk_) > budget and tm_ > pack:
            tm_ = max(pack, _round_up(tm_ // 2, pack))
        while kgrid_bytes(tm_, tn_, tk_) > budget and tk_ > 128:
            tk_ = max(128, tk_ // 2)
        k_p = _round_up(d_emb, tk_)

    rows_p = _round_up(rows, tm_)
    n_p = _round_up(d_vocab, tn_)

    # Zero-pad only when required: K-padding contributes 0 to the dot product
    # (exact); M/N padding is sliced off afterwards. Output lanes are 128-dense.
    if (rows_p, k_p) != (rows, d_emb):
        x2d = jnp.pad(x2d, ((0, rows_p - rows), (0, k_p - d_emb)))
    if (k_p, n_p) != (d_emb, d_vocab):
        # Note: for repeated calls with a fixed vocabulary, pre-pad W_U once at
        # init and pass the padded copy — this per-call pad then disappears.
        w = jnp.pad(w, ((0, k_p - d_emb), (0, n_p - d_vocab)))

    if use_fused:
        grid = (rows_p // tm_, n_p // tn_)
        out2d = pl.pallas_call(
            _unembed_kernel_fused,
            out_shape=jax.ShapeDtypeStruct((rows_p, n_p), out_dtype),
            grid_spec=pltpu.PrefetchScalarGridSpec(
                num_scalar_prefetch=0,
                grid=grid,
                in_specs=[
                    pl.BlockSpec((tm_, k_p), lambda i, j: (i, 0)),
                    pl.BlockSpec((k_p, tn_), lambda i, j: (0, j)),
                ],
                out_specs=pl.BlockSpec((tm_, tn_), lambda i, j: (i, j)),
            ),
            compiler_params=pltpu.CompilerParams(
                dimension_semantics=("parallel", "parallel"),
                vmem_limit_bytes=vmem_limit,
            ),
        )(x2d, w)
    else:
        grid = (rows_p // tm_, n_p // tn_, k_p // tk_)
        if out_is_f32:
            kernel = _unembed_kernel_kgrid_f32out
            scratch = []
        else:
            kernel = _unembed_kernel_kgrid
            scratch = [pltpu.VMEM((tm_, tn_), jnp.float32)]
        out2d = pl.pallas_call(
            kernel,
            out_shape=jax.ShapeDtypeStruct((rows_p, n_p), out_dtype),
            grid_spec=pltpu.PrefetchScalarGridSpec(
                num_scalar_prefetch=0,
                grid=grid,
                in_specs=[
                    pl.BlockSpec((tm_, tk_), lambda i, j, k: (i, k)),
                    pl.BlockSpec((tk_, tn_), lambda i, j, k: (k, j)),
                ],
                out_specs=pl.BlockSpec((tm_, tn_), lambda i, j, k: (i, j)),
                scratch_shapes=scratch,
            ),
            compiler_params=pltpu.CompilerParams(
                dimension_semantics=("parallel", "parallel", "arbitrary"),
                vmem_limit_bytes=vmem_limit,
            ),
        )(x2d, w)

    if (rows_p, n_p) != (rows, d_vocab):
        out2d = out2d[:rows, :d_vocab]
    return out2d.reshape(b, p, d_vocab)


def unembed_ref(x, w_u):
    return jnp.einsum("bpd,dv->bpv", x, w_u)


if __name__ == "__main__":
    key = jax.random.PRNGKey(0)
    k_x, k_w, k_x2, k_w2 = jax.random.split(key, 4)

    # Small shapes consistent with the module: batch=2, seq=8, d_emb=32, d_vocab=64.
    b, p, d_emb, d_vocab = 2, 8, 32, 64
    x = jax.random.normal(k_x, (b, p, d_emb), dtype=jnp.float32)
    # Matches torch.nn.init.normal_(W_U, std=1/sqrt(d_emb)) on randn(d_emb, d_vocab).
    w_u = jax.random.normal(k_w, (d_emb, d_vocab), dtype=jnp.float32) / jnp.sqrt(
        jnp.float32(d_emb)
    )

    out = jax.block_until_ready(unembed(x, w_u))
    ref = unembed_ref(x, w_u)
    assert out.shape == (b, p, d_vocab)
    assert jnp.allclose(out, ref, atol=1e-5, rtol=1e-5), "mismatch vs reference"

    # Second small check with non-aligned shapes (exercises padding + slicing).
    b2, p2, d_emb2, d_vocab2 = 3, 5, 48, 130
    x2 = jax.random.normal(k_x2, (b2, p2, d_emb2), dtype=jnp.float32)
    w2 = jax.random.normal(k_w2, (d_emb2, d_vocab2), dtype=jnp.float32) / jnp.sqrt(
        jnp.float32(d_emb2)
    )
    out2 = jax.block_until_ready(unembed(x2, w2))
    ref2 = unembed_ref(x2, w2)
    assert out2.shape == (b2, p2, d_vocab2)
    assert jnp.allclose(out2, ref2, atol=1e-5, rtol=1e-5), "mismatch vs reference (2)"

    print("KERNEL_OK")
</pallas_src>

<mosaic_0001>
module attributes {stable_mosaic.version = 11 : i64} {
  func.func @_unembed_kernel_fused(%arg0: i32, %arg1: i32, %arg2: memref<16x128xf32, #tpu.memory_space<vmem>>, %arg3: memref<128x128xf32, #tpu.memory_space<vmem>>, %arg4: memref<16x128xf32, #tpu.memory_space<vmem>>) attributes {dimension_semantics = [#tpu.dimension_semantics<parallel>, #tpu.dimension_semantics<parallel>], iteration_bounds = array<i64: 1, 1>, scalar_prefetch = 0 : i64, scratch_operands = 0 : i64, tpu.core_type = #tpu.core_type<tc>, window_params = [{transform_indices = @transform_0, window_bounds = array<i64: 16, 128>}, {transform_indices = @transform_1, window_bounds = array<i64: 128, 128>}, {transform_indices = @transform_2, window_bounds = array<i64: 16, 128>}]} {
    %c0 = arith.constant 0 : index
    %c0_0 = arith.constant 0 : index
    %0 = vector.load %arg2[%c0, %c0_0] : memref<16x128xf32, #tpu.memory_space<vmem>>, vector<16x128xf32>
    %c0_1 = arith.constant 0 : index
    %c0_2 = arith.constant 0 : index
    %1 = vector.load %arg3[%c0_1, %c0_2] : memref<128x128xf32, #tpu.memory_space<vmem>>, vector<128x128xf32>
    %cst = arith.constant dense<0.000000e+00> : vector<16x128xf32>
    %2 = tpu.matmul %0, %1, %cst {dimension_numbers = #tpu.dot_dimension_numbers<[1], [0], [0], [1], [0, 0, 1, 1], [], []>} : vector<16x128xf32>, vector<128x128xf32>, vector<16x128xf32> -> vector<16x128xf32>
    %c0_3 = arith.constant 0 : index
    %c0_4 = arith.constant 0 : index
    %3 = vector.load %arg4[%c0_3, %c0_4] : memref<16x128xf32, #tpu.memory_space<vmem>>, vector<16x128xf32>
    tpu.vector_store %arg4[%c0_3, %c0_4], %2 {strides = array<i32>} : memref<16x128xf32, #tpu.memory_space<vmem>>, vector<16x128xf32>,
    return
  }
  func.func @transform_0(%arg0: i32, %arg1: i32) -> (i32, i32) {
    %c0_i32 = arith.constant 0 : i32
    %c0_i32_0 = arith.constant 0 : i32
    return %arg0, %c0_i32 : i32, i32
  }
  func.func @transform_1(%arg0: i32, %arg1: i32) -> (i32, i32) {
    %c0_i32 = arith.constant 0 : i32
    %c0_i32_0 = arith.constant 0 : i32
    return %c0_i32, %arg1 : i32, i32
  }
  func.func @transform_2(%arg0: i32, %arg1: i32) -> (i32, i32) {
    %c0_i32 = arith.constant 0 : i32
    return %arg0, %arg1 : i32, i32
  }
}

</mosaic_0001>

<bundles_post_ra>
// kernel: tpu_custom_call.1
= control target key start
LH: loop header
LB: loop body
LE: loop exit
PB: predicated region body
PF: predicated region fallthrough
CT: control target
= control target key end

     0   :  { %7 = vsyncpa [#allocation3], 0  ;;  %s315_s0 = inlined_call_operand.hbm [shape: f32[16,128], index: 0, kind: input, shape index: {}]   ;;  %s316_s1 = inlined_call_operand.hbm [shape: f32[128,128], index: 1, kind: input, shape index: {}]   ;;  %s317_s2 = inlined_call_operand.hbm [shape: f32[16,128], index: 2, kind: output, shape index: {}]  }
   0x1   :  { %8 = vsyncpa [#allocation6], 0 }
   0x2   :  { %9 = vsyncpa [#allocation4], 0  ;;  %s277_s9 = smov [#allocation2]  }
   0x3   :  { %s15_s10 = sshll.u32 %s277_s9, 4  ;;  %s16_s10 = int_to_ptr.vmem [resolvable:$true] %s15_s10 }
   0x4   :  { %s219_s11 = scalar_lea.vmem %s16_s10, 256  ;;  %p224_p1 = scmp.lt.s32.totalorder %s16_s10, %s16_s10 }
   0x5   :  { %p220_p0 = scmp.ne.s32.totalorder %s16_s10, %s219_s11  ;;  %p225_p2 = scmp.lt.s32.totalorder %s219_s11, %s219_s11 }
   0x7   :  { %p226_p3 = por %p225_p2, %p224_p1 }
   0x9   :  { %p227_p4 = pnand %p226_p3, %p220_p0 }
   0xb   :  { %230 = shalt.err (!%p227_p4)
}
   0xc   :  { %s278_s12 = smov 128   ;;  %s279_s13 = smov 8  }
   0xd   :  { %21 = dma.hbm_to_vmem [thread:$0]  %s315_s0, 256, %s16_s10, [#allocation3], %s278_s12, %s278_s12, %s279_s13  }
   0xe   :  { %s280_s16 = smov [#allocation5]  }
   0xf   :  { %s27_s17 = sshll.u32 %s280_s16, 4  ;;  %s28_s17 = int_to_ptr.vmem [resolvable:$true] %s27_s17 }
  0x10   :  { %s239_s18 = scalar_lea.vmem %s28_s17, 2048  ;;  %p244_p6 = scmp.lt.s32.totalorder %s28_s17, %s28_s17 }
  0x11   :  { %p240_p5 = scmp.ne.s32.totalorder %s28_s17, %s239_s18  ;;  %p245_p7 = scmp.lt.s32.totalorder %s239_s18, %s239_s18 }
  0x13   :  { %p246_p8 = por %p245_p7, %p244_p6 }
  0x15   :  { %p247_p9 = pnand %p246_p8, %p240_p5 }
  0x17   :  { %250 = shalt.err (!%p247_p9)
}
  0x18   :  { %33 = dma.hbm_to_vmem [thread:$0]  %s316_s1, 2048, %s28_s17, [#allocation6], %s278_s12, %s278_s12, %s279_s13  }
  0x19   :  { %271 = dma.done.wait [#allocation3], 256  }
  0x1a   :  { %272 = vsyncadd [#allocation3], 4294967040 }
  0x1b   :  { %273 = dma.done.wait [#allocation6], 2048  }
  0x1c   :  { %274 = vsyncadd [#allocation6], 4294965248  ;;  %v57_v0 = vld [vmem:[#allocation5 + $0x78] sm:$0xff]  ;;  %v56_v1 = vld [vmem:[#allocation5 + $0x70] sm:$0xff]  ;;  %s281_s0 = smov [#allocation7]  }
  0x1d   :  { %171 = vmatprep.subr.mxu0 %v57_v0  ;;  %v55_v2 = vld [vmem:[#allocation5 + $0x68] sm:$0xff]  ;;  %v54_v3 = vld [vmem:[#allocation5 + $0x60] sm:$0xff]  ;;  %v40_v4 = vld [vmem:[#allocation2] sm:$0xff]  ;;  %s140_s1 = sshll.u32 %s281_s0, 4  ;;  %s141_s1 = int_to_ptr.vmem [resolvable:$true] %s140_s1 }
  0x1e   :  { %172 = vmatpush3.msra.mxu0 %v57_v0  ;;  %v53_v5 = vld [vmem:[#allocation5 + $0x58] sm:$0xff]  ;;  %203 = vmatprep.mubr.f32.mxu0 %v40_v4  ;;  %v52_v6 = vld [vmem:[#allocation5 + $0x50] sm:$0xff]  ;;  %v51_v7 = vld [vmem:[#allocation5 + $0x48] sm:$0xff]  ;;  %s251_s21 = scalar_lea.vmem %s141_s1, 256  ;;  %p256_p11 = scmp.lt.s32.totalorder %s141_s1, %s141_s1 }
  0x1f   :  { %173 = vmatprep.subr.mxu0 %v56_v1  ;;  %v50_v8 = vld [vmem:[#allocation5 + $0x40] sm:$0xff]  ;;  %v49_v9 = vld [vmem:[#allocation5 + $0x38] sm:$0xff]  ;;  %v48_v10 = vld [vmem:[#allocation5 + $0x30] sm:$0xff]  ;;  %p252_p10 = scmp.ne.s32.totalorder %s141_s1, %s251_s21  ;;  %p257_p12 = scmp.lt.s32.totalorder %s251_s21, %s251_s21 }
  0x20   :  { %174 = vmatpush3.msra.mxu0 %v56_v1  ;;  %v47_v11 = vld [vmem:[#allocation5 + $0x28] sm:$0xff]  ;;  %v46_v12 = vld [vmem:[#allocation5 + $0x20] sm:$0xff]  ;;  %v45_v13 = vld [vmem:[#allocation5 + $0x18] sm:$0xff] }
  0x21   :  { %175 = vmatprep.subr.mxu0 %v55_v2  ;;  %v44_v14 = vld [vmem:[#allocation5 + $0x10] sm:$0xff]  ;;  %v43_v15 = vld [vmem:[#allocation5 + $0x8] sm:$0xff]  ;;  %v42_v16 = vld [vmem:[#allocation5] sm:$0xff]  ;;  %p258_p13 = por %p257_p12, %p256_p11 }
  0x22   :  { %176 = vmatpush3.msra.mxu0 %v55_v2  ;;  %v41_v17 = vld [vmem:[#allocation2 + $0x8] sm:$0xff] }
  0x23   :  { %177 = vmatprep.subr.mxu0 %v54_v3  ;;  %p259_p0 = pnand %p258_p13, %p252_p10 }
  0x24   :  { %178 = vmatpush3.msra.mxu0 %v54_v3 }
  0x25   :  { %179 = vmatprep.subr.mxu0 %v53_v5 }
  0x26   :  { %180 = vmatpush3.msra.mxu0 %v53_v5 }
  0x27   :  { %181 = vmatprep.subr.mxu0 %v52_v6 }
  0x28   :  { %182 = vmatpush3.msra.mxu0 %v52_v6 }
  0x29   :  { %183 = vmatprep.subr.mxu0 %v51_v7 }
  0x2a   :  { %184 = vmatpush3.msra.mxu0 %v51_v7 }
  0x2b   :  { %185 = vmatprep.subr.mxu0 %v50_v8 }
  0x2c   :  { %186 = vmatpush3.msra.mxu0 %v50_v8 }
  0x2d   :  { %187 = vmatprep.subr.mxu0 %v49_v9 }
  0x2e   :  { %188 = vmatpush3.msra.mxu0 %v49_v9 }
  0x2f   :  { %189 = vmatprep.subr.mxu0 %v48_v10 }
  0x30   :  { %190 = vmatpush3.msra.mxu0 %v48_v10 }
  0x31   :  { %191 = vmatprep.subr.mxu0 %v47_v11 }
  0x32   :  { %192 = vmatpush3.msra.mxu0 %v47_v11 }
  0x33   :  { %193 = vmatprep.subr.mxu0 %v46_v12 }
  0x34   :  { %194 = vmatpush3.msra.mxu0 %v46_v12 }
  0x35   :  { %195 = vmatprep.subr.mxu0 %v45_v13 }
  0x36   :  { %196 = vmatpush3.msra.mxu0 %v45_v13 }
  0x37   :  { %197 = vmatprep.subr.mxu0 %v44_v14 }
  0x38   :  { %198 = vmatpush3.msra.mxu0 %v44_v14 }
  0x39   :  { %199 = vmatprep.subr.mxu0 %v43_v15 }
  0x3a   :  { %200 = vmatpush3.msra.mxu0 %v43_v15 }
  0x3b   :  { %201 = vmatprep.subr.mxu0 %v42_v16 }
  0x3c   :  { %202 = vmatpush3.msra.mxu0 %v42_v16 }
  0x3d   :  { %204 = vmatmul.mubr.f32.vlgmr.msra.gmra.mxu0 %v41_v17 }
  0xfd   :  { %v205_v18 = vpop.f32.mrf.mxu0 }
  0xfe   :  { %134 = vst [vmem:[#allocation7 + $0x8] sm:$0xff] %v205_v18 }
  0xff   :  { %v124_v19 = vpop.f32.mrf.mxu0 }
 0x100   :  { %133 = vst [vmem:[#allocation7] sm:$0xff] %v124_v19 }
 0x101   :  { %262 = shalt.err (!%p259_p0)
}
 0x102   :  { %146 = dma.vmem_to_hbm [thread:$0]  %s141_s1, 256, %s317_s2, [#allocation4], %s278_s12, %s278_s12, %s279_s13  }
 0x103   :  { %275 = dma.done.wait [#allocation4], 256  }
 0x104   :  { %276 = vsyncadd [#allocation4], 4294967040 }
 0x105   :  { %150 = vsyncpa [#allocation3], 1 }
 0x106   :  { %151 = vsyncpa [#allocation6], 1 }
 0x107   :  { %152 = vsyncpa [#allocation4], 1 }

</bundles_post_ra>
